<compile_context>
chip_gen: v5e
topology: v5e:2x2
jax: 0.10.0
libtpu: 0.0.40
codegen_flags: <defaults>
</compile_context>

<pallas_src>
import functools

import jax
import jax.numpy as jnp
from jax.experimental import pallas as pl
from jax.experimental.pallas import tpu as pltpu

EPS = 1e-5
SSN_BANDS = 5  # SubSpectralNorm(n_chan, 5)


# ----------------------------------------------------------------------------
# Parameter construction (deterministic, synthetic)
# ----------------------------------------------------------------------------
def _quaternion_weight(key, out_c, in_c, kh, kw):
    """Hamilton-product weight construction of QuaternionConv2d."""
    assert out_c % 4 == 0 and in_c % 4 == 0
    ko, ki = out_c // 4, in_c // 4
    kr, kii, kj, kk = jax.random.split(key, 4)
    scale = 1.0 / jnp.sqrt(jnp.float32(in_c * kh * kw))
    r = jax.random.normal(kr, (ko, ki, kh, kw), jnp.float32) * scale
    i = jax.random.normal(kii, (ko, ki, kh, kw), jnp.float32) * scale
    j = jax.random.normal(kj, (ko, ki, kh, kw), jnp.float32) * scale
    k = jax.random.normal(kk, (ko, ki, kh, kw), jnp.float32) * scale
    row_r = jnp.concatenate([r, -i, -j, -k], axis=1)
    row_i = jnp.concatenate([i,  r, -k,  j], axis=1)
    row_j = jnp.concatenate([j,  k,  r, -i], axis=1)
    row_k = jnp.concatenate([k, -j,  i,  r], axis=1)
    return jnp.concatenate([row_r, row_i, row_j, row_k], axis=0)  # (O, I, kh, kw)


def init_params(key, C, S=SSN_BANDS):
    ks = jax.random.split(key, 16)
    p = {}
    # f2: QuaternionConv2d(C, C, (3,1), padding='same') + SubSpectralNorm(C, 5)
    p["qw2"] = _quaternion_weight(ks[0], C, C, 3, 1)
    p["b2"] = 0.1 * jax.random.normal(ks[1], (C,), jnp.float32)
    p["ssn_gamma"] = 1.0 + 0.1 * jax.random.normal(ks[2], (C * S,), jnp.float32)
    p["ssn_beta"] = 0.1 * jax.random.normal(ks[3], (C * S,), jnp.float32)
    p["ssn_mean"] = 0.1 * jax.random.normal(ks[4], (C * S,), jnp.float32)
    p["ssn_var"] = jax.random.uniform(ks[5], (C * S,), jnp.float32, 0.5, 1.5)
    # f1: QuaternionConv2d(C, C, (1,3), 'same') + BN + SiLU + 1x1 QuaternionConv2d + Dropout2d
    p["qw1a"] = _quaternion_weight(ks[6], C, C, 1, 3)
    p["b1a"] = 0.1 * jax.random.normal(ks[7], (C,), jnp.float32)
    p["bn_gamma"] = 1.0 + 0.1 * jax.random.normal(ks[8], (C,), jnp.float32)
    p["bn_beta"] = 0.1 * jax.random.normal(ks[9], (C,), jnp.float32)
    p["bn_mean"] = 0.1 * jax.random.normal(ks[10], (C,), jnp.float32)
    p["bn_var"] = jax.random.uniform(ks[11], (C,), jnp.float32, 0.5, 1.5)
    p["qw1b"] = _quaternion_weight(ks[12], C, C, 1, 1)
    p["b1b"] = 0.1 * jax.random.normal(ks[13], (C,), jnp.float32)
    return p


# ----------------------------------------------------------------------------
# Pallas kernel
# ----------------------------------------------------------------------------
def normal_block_kernel(x_ref, w2_ref, ssn_s_ref, ssn_b_ref, w1a_ref, w1b_ref,
                        cvec_ref, o_ref, *, C, F, T, NT, S):
    FNT = F * NT
    LANE = (F // S) * NT          # == 128 by wrapper assertion: one vreg per SSN band
    x = x_ref[0]                  # (C, FNT) f32, lanes ordered (freq, batch, time)

    # ---- frequency shifts: XLU roll + boundary mask ---------------------------
    lane = jax.lax.broadcasted_iota(jnp.int32, (C, FNT), 1)
    x_m1 = jnp.where(lane >= NT, pltpu.roll(x, NT, axis=1), 0.0)             # x[f-1]
    x_p1 = jnp.where(lane < FNT - NT, pltpu.roll(x, FNT - NT, axis=1), 0.0)  # x[f+1]

    # ---- f2: fused 3-tap (3,1) conv as ONE (C,3C)@(3C,FNT) bf16 matmul --------
    xcat = jnp.concatenate([x_m1, x, x_p1], axis=0).astype(jnp.bfloat16)     # (3C, FNT)
    x1raw = jnp.dot(w2_ref[...], xcat, preferred_element_type=jnp.float32)   # (C, FNT) f32

    # ---- SubSpectralNorm (eval), conv bias folded into the shift --------------
    # Each band is exactly one 128-lane vreg: static slice + sublane-col bcast.
    ssn_s = ssn_s_ref[...]        # (C, S)
    ssn_b = ssn_b_ref[...]        # (C, S)
    tiles = []
    for b in range(S):
        t = x1raw[:, b * LANE:(b + 1) * LANE] * ssn_s[:, b:b + 1] + ssn_b[:, b:b + 1]
        tiles.append(t)
    x1 = jnp.concatenate(tiles, axis=1)                                      # (C, FNT) f32

    # ---- frequency mean: in-register reduction (exact f32) --------------------
    # 1) sum the S lane-tiles (VPU adds); 2) collapse the 128//NT freq groups
    #    inside the vreg with roll+add (XLU) -> result replicated over all lanes.
    acc = tiles[0]
    for b in range(1, S):
        acc = acc + tiles[b]
    sh = LANE // 2
    while sh >= NT:
        acc = acc + pltpu.roll(acc, LANE - sh, axis=1)
        sh //= 2
    x2 = acc * (1.0 / F)          # (C, LANE) f32, value repeats every NT lanes

    # ---- f1: fused (1,3) time conv (BN scale pre-folded into the weight) ------
    # Time-boundary masks from iota; rolls stay inside each NT block because the
    # crossing lanes are exactly the masked t==0 / t==T-1 positions.
    tpos = jax.lax.broadcasted_iota(jnp.int32, (C, LANE), 1) % T
    x2_m1 = jnp.where(tpos != 0, pltpu.roll(x2, 1, axis=1), 0.0)         # x2[t-1]
    x2_p1 = jnp.where(tpos != T - 1, pltpu.roll(x2, LANE - 1, axis=1), 0.0)  # x2[t+1]
    x2cat = jnp.concatenate([x2_m1, x2, x2_p1], axis=0).astype(jnp.bfloat16)  # (3C, LANE)

    y = jnp.dot(w1a_ref[...], x2cat, preferred_element_type=jnp.float32) + cvec_ref[0]
    y = y * jax.nn.sigmoid(y)     # SiLU (EUP)
    z = jnp.dot(w1b_ref[...], y.astype(jnp.bfloat16),
                preferred_element_type=jnp.float32) + cvec_ref[1]         # (C, LANE)
    # Dropout2d: identity in eval mode.

    # ---- repeat over frequency: 128-aligned vreg copies, residual, ReLU -------
    z_rep = jnp.concatenate([z] * S, axis=1)                                 # (C, FNT)
    o_ref[0] = jnp.maximum(x + x1 + z_rep, 0.0)


# ----------------------------------------------------------------------------
# Wrapper: parameter folding (glue) + pallas_call
# ----------------------------------------------------------------------------
def normal_block(x, params, S=SSN_BANDS, batch_per_block=None):
    N, C, F, T = x.shape
    assert C % 4 == 0 and F % S == 0
    NB = N if batch_per_block is None else batch_per_block  # v7x: keep NB even
    assert N % NB == 0
    G = N // NB
    NT = NB * T
    FNT = F * NT
    LANE = 128
    # lane/band alignment invariants for the in-register mean/repeat paths
    assert (F // S) * NT == LANE, "one SSN band must be exactly one 128-lane vreg"
    assert LANE % NT == 0 and ((LANE // NT) & (LANE // NT - 1)) == 0, \
        "freq groups per vreg must be a power of two"

    # fold batch into lanes: (N,C,F,T) -> (G, C, F*NB*T), lanes = (f, nb, t)
    xg = (x.reshape(G, NB, C, F, T)
           .transpose(0, 2, 3, 1, 4)
           .reshape(G, C, FNT)
           .astype(jnp.float32))

    # (3,1) freq-conv taps fused into one (C, 3C) weight, bf16 for the MXU
    w2_taps = jnp.transpose(params["qw2"][:, :, :, 0], (2, 0, 1))        # (3, C, C)
    w2cat = jnp.concatenate([w2_taps[0], w2_taps[1], w2_taps[2]],
                            axis=1).astype(jnp.bfloat16)                 # (C, 3C)

    # SubSpectralNorm (eval): per (channel, band) affine; fold the conv bias
    ssn_scale = params["ssn_gamma"] / jnp.sqrt(params["ssn_var"] + EPS)  # (C*S,)
    ssn_shift = params["ssn_beta"] - params["ssn_mean"] * ssn_scale
    ssn_scale = ssn_scale.reshape(C, S)
    ssn_shift = params["b2"][:, None] * ssn_scale + ssn_shift.reshape(C, S)

    # (1,3) time-conv taps fused; BN (eval) scale folded into the weight rows
    bn_scale = params["bn_gamma"] / jnp.sqrt(params["bn_var"] + EPS)     # (C,)
    bn_shift = (params["b1a"] - params["bn_mean"]) * bn_scale + params["bn_beta"]
    w1a_taps = jnp.transpose(params["qw1a"][:, :, 0, :], (2, 0, 1))      # (3, C, C)
    w1acat = (bn_scale[:, None]
              * jnp.concatenate([w1a_taps[0], w1a_taps[1], w1a_taps[2]],
                                axis=1)).astype(jnp.bfloat16)            # (C, 3C)

    w1b = params["qw1b"][:, :, 0, 0].astype(jnp.bfloat16)                # (C, C)
    # packed per-channel vectors: [BN shift (bias folded), 1x1-conv bias]
    cvec = jnp.stack([bn_shift[:, None], params["b1b"][:, None]], axis=0)  # (2, C, 1)

    out = pl.pallas_call(
        functools.partial(normal_block_kernel, C=C, F=F, T=T, NT=NT, S=S),
        out_shape=jax.ShapeDtypeStruct((G, C, FNT), jnp.float32),
        grid_spec=pltpu.PrefetchScalarGridSpec(
            num_scalar_prefetch=0,
            grid=(G,),
            in_specs=[
                pl.BlockSpec((1, C, FNT), lambda g: (g, 0, 0)),   # x (lane-dense)
                pl.BlockSpec((C, 3 * C), lambda g: (0, 0)),       # fused (3,1) weight (bf16)
                pl.BlockSpec((C, S), lambda g: (0, 0)),           # SSN scale per band
                pl.BlockSpec((C, S), lambda g: (0, 0)),           # SSN shift per band
                pl.BlockSpec((C, 3 * C), lambda g: (0, 0)),       # fused (1,3) weight (BN folded, bf16)
                pl.BlockSpec((C, C), lambda g: (0, 0)),           # 1x1 weight (bf16)
                pl.BlockSpec((2, C, 1), lambda g: (0, 0, 0)),     # packed [bn_shift, b1b]
            ],
            out_specs=pl.BlockSpec((1, C, FNT), lambda g: (g, 0, 0)),
        ),
        compiler_params=pltpu.CompilerParams(dimension_semantics=("parallel",)),
    )(xg, w2cat, ssn_scale, ssn_shift, w1acat, w1b, cvec)

    return (out.reshape(G, C, F, NB, T)
               .transpose(0, 3, 1, 2, 4)
               .reshape(N, C, F, T))


# ----------------------------------------------------------------------------
# Pure-JAX reference (independent path via lax.conv) for validation
# ----------------------------------------------------------------------------
def normal_block_ref(x, params, S=SSN_BANDS):
    N, C, F, T = x.shape

    def conv(v, w):
        return jax.lax.conv_general_dilated(
            v, w, (1, 1), "SAME",
            dimension_numbers=("NCHW", "OIHW", "NCHW"))

    x1 = conv(x, params["qw2"]) + params["b2"][None, :, None, None]
    v = x1.reshape(N, C * S, F // S, T)
    v = ((v - params["ssn_mean"][None, :, None, None])
         / jnp.sqrt(params["ssn_var"][None, :, None, None] + EPS)
         * params["ssn_gamma"][None, :, None, None]
         + params["ssn_beta"][None, :, None, None])
    x1 = v.reshape(N, C, F, T)

    x2 = jnp.mean(x1, axis=2, keepdims=True)
    y = conv(x2, params["qw1a"]) + params["b1a"][None, :, None, None]
    y = ((y - params["bn_mean"][None, :, None, None])
         / jnp.sqrt(params["bn_var"][None, :, None, None] + EPS)
         * params["bn_gamma"][None, :, None, None]
         + params["bn_beta"][None, :, None, None])
    y = y * jax.nn.sigmoid(y)
    z = conv(y, params["qw1b"]) + params["b1b"][None, :, None, None]
    z = jnp.tile(z, (1, 1, F, 1))
    return jnp.maximum(x + x1 + z, 0.0)


if __name__ == "__main__":
    key = jax.random.PRNGKey(0)
    N, C, F, T = 2, 8, 20, 16   # C % 4 == 0 (quaternion), F % 5 == 0 (SSN bands)
    kx, kp = jax.random.split(key)
    x = jax.random.normal(kx, (N, C, F, T), jnp.float32)
    params = init_params(kp, C)

    out = normal_block(x, params)
    out = jax.block_until_ready(out)

    ref = normal_block_ref(x, params)
    max_err = float(jnp.max(jnp.abs(out - ref)))
    # Tolerance accounts for bf16 MXU passes on both the kernel and the
    # lax.conv reference path (mean/repeat are exact f32 in the kernel).
    assert jnp.allclose(out, ref, rtol=2e-2, atol=2e-2), f"max abs err = {max_err}"
    print("KERNEL_OK")
</pallas_src>

<mosaic_0001>
module attributes {stable_mosaic.version = 11 : i64} {
  func.func @normal_block_kernel(%arg0: i32, %arg1: memref<1x8x640xf32, #tpu.memory_space<vmem>>, %arg2: memref<8x24xbf16, #tpu.memory_space<vmem>>, %arg3: memref<8x5xf32, #tpu.memory_space<vmem>>, %arg4: memref<8x5xf32, #tpu.memory_space<vmem>>, %arg5: memref<8x24xbf16, #tpu.memory_space<vmem>>, %arg6: memref<8x8xbf16, #tpu.memory_space<vmem>>, %arg7: memref<2x8x1xf32, #tpu.memory_space<vmem>>, %arg8: memref<1x8x640xf32, #tpu.memory_space<vmem>>) attributes {dimension_semantics = [#tpu.dimension_semantics<parallel>], iteration_bounds = array<i64: 1>, scalar_prefetch = 0 : i64, scratch_operands = 0 : i64, tpu.core_type = #tpu.core_type<tc>, window_params = [{transform_indices = @transform_0, window_bounds = array<i64: 1, 8, 640>}, {pipeline_mode = #tpu.pipeline_mode<synchronous>, transform_indices = @transform_1, window_bounds = array<i64: 8, 24>}, {pipeline_mode = #tpu.pipeline_mode<synchronous>, transform_indices = @transform_2, window_bounds = array<i64: 8, 5>}, {pipeline_mode = #tpu.pipeline_mode<synchronous>, transform_indices = @transform_3, window_bounds = array<i64: 8, 5>}, {pipeline_mode = #tpu.pipeline_mode<synchronous>, transform_indices = @transform_4, window_bounds = array<i64: 8, 24>}, {pipeline_mode = #tpu.pipeline_mode<synchronous>, transform_indices = @transform_5, window_bounds = array<i64: 8, 8>}, {pipeline_mode = #tpu.pipeline_mode<synchronous>, transform_indices = @transform_6, window_bounds = array<i64: 2, 8, 1>}, {transform_indices = @transform_7, window_bounds = array<i64: 1, 8, 640>}]} {
    %c0 = arith.constant 0 : index
    %c0_0 = arith.constant 0 : index
    %c0_1 = arith.constant 0 : index
    %0 = vector.load %arg1[%c0, %c0_0, %c0_1] : memref<1x8x640xf32, #tpu.memory_space<vmem>>, vector<1x8x640xf32>
    %1 = vector.shape_cast %0 : vector<1x8x640xf32> to vector<8x640xf32>
    %2 = tpu.iota {dimensions = array<i32: 1>} : vector<8x640xi32>
    %c32_i32 = arith.constant 32 : i32
    %3 = vector.broadcast %c32_i32 : i32 to vector<8x640xi32>
    %4 = arith.cmpi sge, %2, %3 : vector<8x640xi32>
    %c32_i32_2 = arith.constant 32 : i32
    %5 = tpu.dynamic_rotate %1 by %c32_i32_2 dim 1 : vector<8x640xf32>, i32 -> vector<8x640xf32>
    %cst = arith.constant 0.000000e+00 : f32
    %6 = vector.broadcast %cst : f32 to vector<8x640xf32>
    %7 = arith.select %4, %5, %6 : vector<8x640xi1>, vector<8x640xf32>
    %c608_i32 = arith.constant 608 : i32
    %8 = vector.broadcast %c608_i32 : i32 to vector<8x640xi32>
    %9 = arith.cmpi slt, %2, %8 : vector<8x640xi32>
    %c608_i32_3 = arith.constant 608 : i32
    %10 = tpu.dynamic_rotate %1 by %c608_i32_3 dim 1 : vector<8x640xf32>, i32 -> vector<8x640xf32>
    %cst_4 = arith.constant 0.000000e+00 : f32
    %11 = vector.broadcast %cst_4 : f32 to vector<8x640xf32>
    %12 = arith.select %9, %10, %11 : vector<8x640xi1>, vector<8x640xf32>
    %13 = tpu.concatenate %7, %1, %12 in 0 : vector<8x640xf32>, vector<8x640xf32>, vector<8x640xf32> -> vector<24x640xf32>
    %14 = arith.truncf %13 : vector<24x640xf32> to vector<24x640xbf16>
    %c0_5 = arith.constant 0 : index
    %c0_6 = arith.constant 0 : index
    %15 = vector.load %arg2[%c0_5, %c0_6] : memref<8x24xbf16, #tpu.memory_space<vmem>>, vector<8x24xbf16>
    %cst_7 = arith.constant dense<0.000000e+00> : vector<8x640xf32>
    %16 = tpu.matmul %15, %14, %cst_7 {dimension_numbers = #tpu.dot_dimension_numbers<[1], [0], [0], [1], [0, 0, 1, 1], [], []>} : vector<8x24xbf16>, vector<24x640xbf16>, vector<8x640xf32> -> vector<8x640xf32>
    %c0_8 = arith.constant 0 : index
    %c0_9 = arith.constant 0 : index
    %17 = vector.load %arg3[%c0_8, %c0_9] : memref<8x5xf32, #tpu.memory_space<vmem>>, vector<8x5xf32>
    %c0_10 = arith.constant 0 : index
    %c0_11 = arith.constant 0 : index
    %18 = vector.load %arg4[%c0_10, %c0_11] : memref<8x5xf32, #tpu.memory_space<vmem>>, vector<8x5xf32>
    %19 = vector.extract_strided_slice %16 {offsets = [0, 0], sizes = [8, 128], strides = [1, 1]} : vector<8x640xf32> to vector<8x128xf32>
    %20 = vector.extract_strided_slice %17 {offsets = [0, 0], sizes = [8, 1], strides = [1, 1]} : vector<8x5xf32> to vector<8x1xf32>
    %21 = vector.broadcast %20 : vector<8x1xf32> to vector<8x128xf32>
    %22 = arith.mulf %19, %21 : vector<8x128xf32>
    %23 = vector.extract_strided_slice %18 {offsets = [0, 0], sizes = [8, 1], strides = [1, 1]} : vector<8x5xf32> to vector<8x1xf32>
    %24 = vector.broadcast %23 : vector<8x1xf32> to vector<8x128xf32>
    %25 = arith.addf %22, %24 : vector<8x128xf32>
    %26 = vector.extract_strided_slice %16 {offsets = [0, 128], sizes = [8, 128], strides = [1, 1]} : vector<8x640xf32> to vector<8x128xf32>
    %27 = vector.extract_strided_slice %17 {offsets = [0, 1], sizes = [8, 1], strides = [1, 1]} : vector<8x5xf32> to vector<8x1xf32>
    %28 = vector.broadcast %27 : vector<8x1xf32> to vector<8x128xf32>
    %29 = arith.mulf %26, %28 : vector<8x128xf32>
    %30 = vector.extract_strided_slice %18 {offsets = [0, 1], sizes = [8, 1], strides = [1, 1]} : vector<8x5xf32> to vector<8x1xf32>
    %31 = vector.broadcast %30 : vector<8x1xf32> to vector<8x128xf32>
    %32 = arith.addf %29, %31 : vector<8x128xf32>
    %33 = vector.extract_strided_slice %16 {offsets = [0, 256], sizes = [8, 128], strides = [1, 1]} : vector<8x640xf32> to vector<8x128xf32>
    %34 = vector.extract_strided_slice %17 {offsets = [0, 2], sizes = [8, 1], strides = [1, 1]} : vector<8x5xf32> to vector<8x1xf32>
    %35 = vector.broadcast %34 : vector<8x1xf32> to vector<8x128xf32>
    %36 = arith.mulf %33, %35 : vector<8x128xf32>
    %37 = vector.extract_strided_slice %18 {offsets = [0, 2], sizes = [8, 1], strides = [1, 1]} : vector<8x5xf32> to vector<8x1xf32>
    %38 = vector.broadcast %37 : vector<8x1xf32> to vector<8x128xf32>
    %39 = arith.addf %36, %38 : vector<8x128xf32>
    %40 = vector.extract_strided_slice %16 {offsets = [0, 384], sizes = [8, 128], strides = [1, 1]} : vector<8x640xf32> to vector<8x128xf32>
    %41 = vector.extract_strided_slice %17 {offsets = [0, 3], sizes = [8, 1], strides = [1, 1]} : vector<8x5xf32> to vector<8x1xf32>
    %42 = vector.broadcast %41 : vector<8x1xf32> to vector<8x128xf32>
    %43 = arith.mulf %40, %42 : vector<8x128xf32>
    %44 = vector.extract_strided_slice %18 {offsets = [0, 3], sizes = [8, 1], strides = [1, 1]} : vector<8x5xf32> to vector<8x1xf32>
    %45 = vector.broadcast %44 : vector<8x1xf32> to vector<8x128xf32>
    %46 = arith.addf %43, %45 : vector<8x128xf32>
    %47 = vector.extract_strided_slice %16 {offsets = [0, 512], sizes = [8, 128], strides = [1, 1]} : vector<8x640xf32> to vector<8x128xf32>
    %48 = vector.extract_strided_slice %17 {offsets = [0, 4], sizes = [8, 1], strides = [1, 1]} : vector<8x5xf32> to vector<8x1xf32>
    %49 = vector.broadcast %48 : vector<8x1xf32> to vector<8x128xf32>
    %50 = arith.mulf %47, %49 : vector<8x128xf32>
    %51 = vector.extract_strided_slice %18 {offsets = [0, 4], sizes = [8, 1], strides = [1, 1]} : vector<8x5xf32> to vector<8x1xf32>
    %52 = vector.broadcast %51 : vector<8x1xf32> to vector<8x128xf32>
    %53 = arith.addf %50, %52 : vector<8x128xf32>
    %54 = tpu.concatenate %25, %32, %39, %46, %53 in 1 : vector<8x128xf32>, vector<8x128xf32>, vector<8x128xf32>, vector<8x128xf32>, vector<8x128xf32> -> vector<8x640xf32>
    %55 = arith.addf %25, %32 : vector<8x128xf32>
    %56 = arith.addf %55, %39 : vector<8x128xf32>
    %57 = arith.addf %56, %46 : vector<8x128xf32>
    %58 = arith.addf %57, %53 : vector<8x128xf32>
    %c64_i32 = arith.constant 64 : i32
    %59 = tpu.dynamic_rotate %58 by %c64_i32 dim 1 : vector<8x128xf32>, i32 -> vector<8x128xf32>
    %60 = arith.addf %58, %59 : vector<8x128xf32>
    %c96_i32 = arith.constant 96 : i32
    %61 = tpu.dynamic_rotate %60 by %c96_i32 dim 1 : vector<8x128xf32>, i32 -> vector<8x128xf32>
    %62 = arith.addf %60, %61 : vector<8x128xf32>
    %cst_12 = arith.constant 5.000000e-02 : f32
    %63 = vector.broadcast %cst_12 : f32 to vector<8x128xf32>
    %64 = arith.mulf %62, %63 : vector<8x128xf32>
    %65 = tpu.iota {dimensions = array<i32: 1>} : vector<8x128xi32>
    %c16_i32 = arith.constant 16 : i32
    %c0_i32 = arith.constant 0 : i32
    %66 = arith.cmpi eq, %c16_i32, %c0_i32 : i32
    %c1_i32 = arith.constant 1 : i32
    %67 = arith.select %66, %c1_i32, %c16_i32 : i32
    %68 = vector.broadcast %67 : i32 to vector<8x128xi32>
    %69 = arith.remsi %65, %68 : vector<8x128xi32>
    %c0_i32_13 = arith.constant 0 : i32
    %70 = vector.broadcast %c0_i32_13 : i32 to vector<8x128xi32>
    %71 = arith.cmpi ne, %69, %70 : vector<8x128xi32>
    %c0_i32_14 = arith.constant 0 : i32
    %72 = vector.broadcast %c0_i32_14 : i32 to vector<8x128xi32>
    %73 = arith.cmpi slt, %69, %72 : vector<8x128xi32>
    %c0_i32_15 = arith.constant 0 : i32
    %74 = arith.cmpi slt, %67, %c0_i32_15 : i32
    %75 = vector.broadcast %74 : i1 to vector<8x128xi1>
    %76 = vector.broadcast %75 : vector<8x128xi1> to vector<8x128xi1>
    %77 = arith.xori %73, %76 : vector<8x128xi1>
    %78 = arith.andi %77, %71 : vector<8x128xi1>
    %79 = vector.broadcast %67 : i32 to vector<8x128xi32>
    %80 = arith.addi %69, %79 : vector<8x128xi32>
    %81 = arith.select %78, %80, %69 : vector<8x128xi1>, vector<8x128xi32>
    %c0_i32_16 = arith.constant 0 : i32
    %82 = vector.broadcast %c0_i32_16 : i32 to vector<8x128xi32>
    %83 = arith.cmpi ne, %81, %82 : vector<8x128xi32>
    %c1_i32_17 = arith.constant 1 : i32
    %84 = tpu.dynamic_rotate %64 by %c1_i32_17 dim 1 : vector<8x128xf32>, i32 -> vector<8x128xf32>
    %cst_18 = arith.constant 0.000000e+00 : f32
    %85 = vector.broadcast %cst_18 : f32 to vector<8x128xf32>
    %86 = arith.select %83, %84, %85 : vector<8x128xi1>, vector<8x128xf32>
    %c15_i32 = arith.constant 15 : i32
    %87 = vector.broadcast %c15_i32 : i32 to vector<8x128xi32>
    %88 = arith.cmpi ne, %81, %87 : vector<8x128xi32>
    %c127_i32 = arith.constant 127 : i32
    %89 = tpu.dynamic_rotate %64 by %c127_i32 dim 1 : vector<8x128xf32>, i32 -> vector<8x128xf32>
    %cst_19 = arith.constant 0.000000e+00 : f32
    %90 = vector.broadcast %cst_19 : f32 to vector<8x128xf32>
    %91 = arith.select %88, %89, %90 : vector<8x128xi1>, vector<8x128xf32>
    %92 = tpu.concatenate %86, %64, %91 in 0 : vector<8x128xf32>, vector<8x128xf32>, vector<8x128xf32> -> vector<24x128xf32>
    %93 = arith.truncf %92 : vector<24x128xf32> to vector<24x128xbf16>
    %c0_20 = arith.constant 0 : index
    %c0_21 = arith.constant 0 : index
    %94 = vector.load %arg5[%c0_20, %c0_21] : memref<8x24xbf16, #tpu.memory_space<vmem>>, vector<8x24xbf16>
    %cst_22 = arith.constant dense<0.000000e+00> : vector<8x128xf32>
    %95 = tpu.matmul %94, %93, %cst_22 {dimension_numbers = #tpu.dot_dimension_numbers<[1], [0], [0], [1], [0, 0, 1, 1], [], []>} : vector<8x24xbf16>, vector<24x128xbf16>, vector<8x128xf32> -> vector<8x128xf32>
    %c0_23 = arith.constant 0 : index
    %c0_24 = arith.constant 0 : index
    %c0_25 = arith.constant 0 : index
    %96 = vector.load %arg7[%c0_23, %c0_24, %c0_25] : memref<2x8x1xf32, #tpu.memory_space<vmem>>, vector<1x8x1xf32>
    %97 = vector.shape_cast %96 : vector<1x8x1xf32> to vector<8x1xf32>
    %98 = vector.broadcast %97 : vector<8x1xf32> to vector<8x128xf32>
    %99 = arith.addf %95, %98 : vector<8x128xf32>
    %100 = arith.negf %99 : vector<8x128xf32>
    %101 = math.exp %100 : vector<8x128xf32>
    %cst_26 = arith.constant 1.000000e+00 : f32
    %102 = vector.broadcast %cst_26 : f32 to vector<8x128xf32>
    %103 = arith.addf %102, %101 : vector<8x128xf32>
    %104 = arith.divf %102, %103 : vector<8x128xf32>
    %105 = arith.mulf %99, %104 : vector<8x128xf32>
    %c0_27 = arith.constant 0 : index
    %c0_28 = arith.constant 0 : index
    %106 = vector.load %arg6[%c0_27, %c0_28] : memref<8x8xbf16, #tpu.memory_space<vmem>>, vector<8x8xbf16>
    %107 = arith.truncf %105 : vector<8x128xf32> to vector<8x128xbf16>
    %cst_29 = arith.constant dense<0.000000e+00> : vector<8x128xf32>
    %108 = tpu.matmul %106, %107, %cst_29 {dimension_numbers = #tpu.dot_dimension_numbers<[1], [0], [0], [1], [0, 0, 1, 1], [], []>} : vector<8x8xbf16>, vector<8x128xbf16>, vector<8x128xf32> -> vector<8x128xf32>
    %c1 = arith.constant 1 : index
    %c0_30 = arith.constant 0 : index
    %c0_31 = arith.constant 0 : index
    %109 = vector.load %arg7[%c1, %c0_30, %c0_31] : memref<2x8x1xf32, #tpu.memory_space<vmem>>, vector<1x8x1xf32>
    %110 = vector.shape_cast %109 : vector<1x8x1xf32> to vector<8x1xf32>
    %111 = vector.broadcast %110 : vector<8x1xf32> to vector<8x128xf32>
    %112 = arith.addf %108, %111 : vector<8x128xf32>
    %113 = tpu.concatenate %112, %112, %112, %112, %112 in 1 : vector<8x128xf32>, vector<8x128xf32>, vector<8x128xf32>, vector<8x128xf32>, vector<8x128xf32> -> vector<8x640xf32>
    %114 = arith.addf %1, %54 : vector<8x640xf32>
    %115 = arith.addf %114, %113 : vector<8x640xf32>
    %cst_32 = arith.constant 0.000000e+00 : f32
    %116 = vector.broadcast %cst_32 : f32 to vector<8x640xf32>
    %117 = arith.maximumf %115, %116 : vector<8x640xf32>
    %c0_33 = arith.constant 0 : index
    %c0_34 = arith.constant 0 : index
    %c0_35 = arith.constant 0 : index
    %118 = vector.load %arg8[%c0_33, %c0_34, %c0_35] : memref<1x8x640xf32, #tpu.memory_space<vmem>>, vector<1x8x640xf32>
    %119 = vector.shape_cast %118 : vector<1x8x640xf32> to vector<8x640xf32>
    %120 = vector.shape_cast %117 : vector<8x640xf32> to vector<1x8x640xf32>
    tpu.vector_store %arg8[%c0_33, %c0_34, %c0_35], %120 {strides = array<i32>} : memref<1x8x640xf32, #tpu.memory_space<vmem>>, vector<1x8x640xf32>,
    return
  }
  func.func @transform_0(%arg0: i32) -> (i32, i32, i32) {
    %c0_i32 = arith.constant 0 : i32
    %c0_i32_0 = arith.constant 0 : i32
    %c0_i32_1 = arith.constant 0 : i32
    return %arg0, %c0_i32, %c0_i32_0 : i32, i32, i32
  }
  func.func @transform_1(%arg0: i32) -> (i32, i32) {
    %c0_i32 = arith.constant 0 : i32
    %c0_i32_0 = arith.constant 0 : i32
    %c0_i32_1 = arith.constant 0 : i32
    return %c0_i32, %c0_i32_0 : i32, i32
  }
  func.func @transform_2(%arg0: i32) -> (i32, i32) {
    %c0_i32 = arith.constant 0 : i32
    %c0_i32_0 = arith.constant 0 : i32
    %c0_i32_1 = arith.constant 0 : i32
    return %c0_i32, %c0_i32_0 : i32, i32
  }
  func.func @transform_3(%arg0: i32) -> (i32, i32) {
    %c0_i32 = arith.constant 0 : i32
    %c0_i32_0 = arith.constant 0 : i32
    %c0_i32_1 = arith.constant 0 : i32
    return %c0_i32, %c0_i32_0 : i32, i32
  }
  func.func @transform_4(%arg0: i32) -> (i32, i32) {
    %c0_i32 = arith.constant 0 : i32
    %c0_i32_0 = arith.constant 0 : i32
    %c0_i32_1 = arith.constant 0 : i32
    return %c0_i32, %c0_i32_0 : i32, i32
  }
  func.func @transform_5(%arg0: i32) -> (i32, i32) {
    %c0_i32 = arith.constant 0 : i32
    %c0_i32_0 = arith.constant 0 : i32
    %c0_i32_1 = arith.constant 0 : i32
    return %c0_i32, %c0_i32_0 : i32, i32
  }
  func.func @transform_6(%arg0: i32) -> (i32, i32, i32) {
    %c0_i32 = arith.constant 0 : i32
    %c0_i32_0 = arith.constant 0 : i32
    %c0_i32_1 = arith.constant 0 : i32
    %c0_i32_2 = arith.constant 0 : i32
    return %c0_i32, %c0_i32_0, %c0_i32_1 : i32, i32, i32
  }
  func.func @transform_7(%arg0: i32) -> (i32, i32, i32) {
    %c0_i32 = arith.constant 0 : i32
    %c0_i32_0 = arith.constant 0 : i32
    %c0_i32_1 = arith.constant 0 : i32
    return %arg0, %c0_i32, %c0_i32_0 : i32, i32, i32
  }
}

</mosaic_0001>

<bundles_post_ra>
// kernel: tpu_custom_call.1
= control target key start
LH: loop header
LB: loop body
LE: loop exit
PB: predicated region body
PF: predicated region fallthrough
CT: control target
= control target key end

     0   :  { %12 = vsyncpa [#allocation3], 0  ;;  %s839_s0 = inlined_call_operand.hbm [shape: f32[1,8,640], index: 0, kind: input, shape index: {}]   ;;  %s840_s1 = inlined_call_operand.hbm [shape: bf16[8,24], index: 1, kind: input, shape index: {}]   ;;  %s841_s2 = inlined_call_operand.vmem [shape: f32[8,5], index: 2, kind: input, shape index: {}]   ;;  %s842_s3 = inlined_call_operand.vmem [shape: f32[8,5], index: 3, kind: input, shape index: {}]   ;;  %s843_s4 = inlined_call_operand.hbm [shape: bf16[8,24], index: 4, kind: input, shape index: {}]   ;;  %s844_s5 = inlined_call_operand.hbm [shape: bf16[8,8], index: 5, kind: input, shape index: {}]   ;;  %s845_s6 = inlined_call_operand.vmem [shape: f32[2,8,1], index: 6, kind: input, shape index: {}]   ;;  %s846_s7 = inlined_call_operand.hbm [shape: f32[1,8,640], index: 7, kind: output, shape index: {}]  }
   0x1   :  { %13 = vsyncpa [#allocation6], 0 }
   0x2   :  { %14 = vsyncpa [#allocation9], 0  ;;  %s32_s26 = sshll.u32 %s840_s1, 4  ;;  %s33_s26 = int_to_ptr.hbm [resolvable:$true] %s32_s26 }
   0x3   :  { %15 = vsyncpa [#allocation4], 0  ;;  %s638_s27 = smov [#allocation5]   ;;  %s21_s8 = sshll.u32 %s839_s0, 4  ;;  %s22_s8 = int_to_ptr.hbm [resolvable:$true] %s21_s8 }
   0x4   :  { %s34_s28 = sshll.u32 %s638_s27, 4  ;;  %s639_s9 = smov [#allocation2]   ;;  %s35_s28 = int_to_ptr.vmem [resolvable:$true] %s34_s28 }
   0x5   :  { %37 = dma.hbm_to_vmem [thread:$0]  %s33_s26, 64, %s35_s28, [#allocation6]  }
   0x6   :  { %s23_s10 = sshll.u32 %s639_s9, 4  ;;  %s47_s13 = sshll.u32 %s843_s4, 4  ;;  %s24_s10 = int_to_ptr.vmem [resolvable:$true] %s23_s10  ;;  %s48_s13 = int_to_ptr.hbm [resolvable:$true] %s47_s13 }
   0x7   :  { %26 = dma.hbm_to_vmem [thread:$0]  %s22_s8, 640, %s24_s10, [#allocation3]  }
   0x8   :  { %s58_s15 = sshll.u32 %s844_s5, 4  ;;  %s640_s16 = smov [#allocation7]   ;;  %s59_s15 = int_to_ptr.hbm [resolvable:$true] %s58_s15 }
   0x9   :  { %s49_s17 = sshll.u32 %s640_s16, 4  ;;  %s641_s0 = smov [#allocation8]   ;;  %s50_s17 = int_to_ptr.vmem [resolvable:$true] %s49_s17 }
   0xa   :  { %52 = dma.hbm_to_vmem [thread:$0]  %s48_s13, 64, %s50_s17, [#allocation6]  }
   0xb   :  { %s60_s18 = sshll.u32 %s641_s0, 4  ;;  %s61_s18 = int_to_ptr.vmem [resolvable:$true] %s60_s18 }
   0xc   :  { %63 = dma.hbm_to_vmem [thread:$0]  %s59_s15, 64, %s61_s18, [#allocation9]  }
   0xd   :  { %630 = dma.done.wait [#allocation3], 640  }
   0xe   :  { %631 = vsyncadd [#allocation3], 4294966656 }
   0xf   :  { %632 = dma.done.wait [#allocation6], 128  }
  0x10   :  { %633 = vsyncadd [#allocation6], 4294967168 }
  0x11   :  { %634 = dma.done.wait [#allocation9], 64  }
  0x12   :  { %635 = vsyncadd [#allocation9], 4294967232  ;;  %v706_v0 = vld [vmem:[#allocation2 + $0x10] sm:$0xff]  ;;  %v708_v1 = vld [vmem:[#allocation2 + $0x18] sm:$0xff]  ;;  %s642_s4 = smov 96   ;;  %s643_s5 = smov 32   ;;  %v88_v13 = vlaneseq }
  0x13   :  { %v710_v2 = vld [vmem:[#allocation2] sm:$0xff]  ;;  %v484_v3 = vpack.i.bf16 %v708_v1, %v706_v0  ;;  %v714_v4 = vld [vmem:[#allocation2 + $0x8] sm:$0xff]  ;;  %v644_v9 = vmov 1   ;;  %v645_v12 = vmov 0   ;;  %v646_v16 = vmov 2   ;;  %s652_s23 = smov 127  }
  0x14   :  { %v474_v5 = vpack.i.bf16 %v714_v4, %v710_v2  ;;  %v489_v6 = vpack.i.bf16 %v706_v0, %v714_v4  ;;  %v722_v7 = vld [vmem:[#allocation2 + $0x20] sm:$0xff]  ;;  %495 = vset.pattern.permute.xlu1 %v644_v9  ;;  %494 = vset.pattern.permute.xlu0 %v645_v12  ;;  %v745_v14 = vand.u32 127, %v88_v13  ;;  %vm161_vm2 = vcmask 1043456   ;;  %v156_v48 = vld [vmem:[#allocation5] sm:$0xf]  ;;  %s431_s8 = sshll.u32 %s846_s7, 4  ;;  %s432_s8 = int_to_ptr.hbm [resolvable:$true] %s431_s8 }
  0x15   :  { %485 = vrot.lane.b32.xlu1 %v484_v3, %s642_s4  ;;  %v479_v8 = vpack.i.bf16 %v722_v7, %v710_v2  ;;  %v732_v10 = vld [vmem:[%s841_s2] sm:$0xff]  ;;  %496 = vset.pattern.permute.xlu2 %v645_v12  ;;  %v647_v27 = vmov 3   ;;  %vm157_vm5 = vcmask 195584   ;;  %vm648_vm6 = vmmov 1   ;;  %s650_s2 = smov 64  }
  0x16   :  { %475 = vrot.lane.b32.xlu0 %v474_v5, %s642_s4  ;;  %490 = vrot.lane.b32.xlu2 %v489_v6, %s643_s5  ;;  %v738_v11 = vld [vmem:[%s842_s3] sm:$0xff]  ;;  %vm135_vm0 = vcmp.lt.s32.totalorder %v745_v14, 96  ;;  %vm109_vm1 = vcmp.lt.s32.totalorder %v745_v14, 32  ;;  %v93_v26 = vadd.s32 512, %v745_v14  ;;  %vm94_vm4 = vcmp.ge.s32.totalorder %v745_v14, 32  ;;  %s651_s3 = smov 1  }
  0x17   :  { %vm443_vm7 = vmpackc.low %vm648_vm6, %vm94_vm4  ;;  %v649_v53 = vmov 4   ;;  %vm384_vm15 = vcmask 64512  }
  0x18   :  { %vm124_vm3 = vcmp.lt.s32.totalorder %v93_v26, 608 }
  0x1d   :  { %133 = vrot.lane.b32.xlu1 %v722_v7, %s642_s4 }
  0x1e   :  { %480 = vrot.lane.b32.xlu0 %v479_v8, %s643_s5  ;;  %105 = vrot.lane.b32.xlu2 %v708_v1, %s643_s5 }
  0x25   :  { %257 = vperm.xlu1 %495, %v732_v10  }
  0x26   :  { %246 = vperm.xlu0 %494, %v732_v10   ;;  %252 = vperm.xlu2 %496, %v738_v11  }
  0x2d   :  { %262 = vperm.xlu1 %495, %v738_v11  }
  0x2e   :  { %498 = vset.pattern.permute.xlu0 %v646_v16  ;;  %497 = vset.pattern.permute.xlu2 %v646_v16 }
  0x2f   :  { %272 = vperm.xlu0 %498, %v738_v11   ;;  %267 = vperm.xlu2 %497, %v732_v10  }
  0x35   :  { %499 = vset.pattern.permute.xlu1 %v647_v27 }
  0x36   :  { %277 = vperm.xlu1 %499, %v732_v10  }
  0x37   :  { %500 = vset.pattern.permute.xlu2 %v647_v27  ;;  %505 = vset.pattern.permute.xlu0 %v645_v12 }
  0x38   :  { %282 = vperm.xlu2 %500, %v738_v11  }
  0x3e   :  { %501 = vset.pattern.permute.xlu1 %v649_v53 }
  0x3f   :  { %287 = vperm.xlu1 %501, %v732_v10  }
  0x40   :  { %502 = vset.pattern.permute.xlu2 %v649_v53  ;;  %v456_v53 = vld [vmem:[%s845_s6 + $0x8] sm:$0xff] }
  0x41   :  { %292 = vperm.xlu2 %502, %v738_v11  }
  0x47   :  { %503 = vset.pattern.permute.xlu1 %v645_v12 }
  0x49   :  { %504 = vset.pattern.permute.xlu2 %v645_v12 }
  0x70   :  { %v491_v15 = vpop.permute.xlu2 %490 }
  0x71   :  { %v493_v18 = vunpack.i.h.bf16 %v491_v15  ;;  %v492_v19 = vunpack.i.l.bf16 %v491_v15 }
  0x73   :  { %v112_v31 = vsel %vm109_vm1, %v492_v19, %v493_v18 }
  0x74   :  { %v148_v37 = vpack.c.bf16 %v706_v0, %v112_v31 }
  0x78   :  { %v106_v39 = vpop.permute.xlu2 %105 }
  0x79   :  { %v111_v43 = vsel %vm109_vm1, %v493_v18, %v106_v39 }
  0x7a   :  { %v149_v57 = vpack.c.bf16 %v708_v1, %v111_v43 }
  0x80   :  { %v253_v60 = vpop.permute.xlu2 %252 }
  0x87   :  { %v486_v17 = vpop.permute.xlu1 %485 }
  0x88   :  { %v488_v20 = vunpack.i.h.bf16 %v486_v17  ;;  %v487_v21 = vunpack.i.l.bf16 %v486_v17  ;;  %v476_v22 = vpop.permute.xlu0 %475 }
  0x89   :  { %v478_v23 = vunpack.i.h.bf16 %v476_v22  ;;  %v477_v24 = vunpack.i.l.bf16 %v476_v22  ;;  %v268_v62 = vpop.permute.xlu2 %267 }
  0x8a   :  { %v137_v25 = vsel %vm135_vm0, %v487_v21, %v488_v20 }
  0x8b   :  { %v139_v28 = vsel %vm135_vm0, %v477_v24, %v478_v23  ;;  %v138_v29 = vsel %vm135_vm0, %v478_v23, %v487_v21  ;;  %v153_v30 = vpack.c.bf16 %v137_v25, %v137_v25 }
  0x8c   :  { %v151_v32 = vpack.c.bf16 %v139_v28, %v139_v28  ;;  %v152_v33 = vpack.c.bf16 %v138_v29, %v138_v29 }
  0x8d   :  { %v169_v34 = vsel %vm161_vm2, %v153_v30, 0 }
  0x8e   :  { %v163_v35 = vsel %vm161_vm2, %v151_v32, 0  ;;  %v166_v36 = vsel %vm161_vm2, %v152_v33, 0  ;;  %209 = vmatpush.bf16.msra.mxu2 %v169_v34 }
  0x8f   :  { %183 = vmatpush.bf16.msra.mxu0 %v163_v35  ;;  %196 = vmatpush.bf16.msra.mxu1 %v166_v36  ;;  %v134_v38 = vpop.permute.xlu1 %133 }
  0x90   :  { %v136_v40 = vsel %vm135_vm0, %v488_v20, %v134_v38  ;;  %v140_v41 = vsel %vm135_vm0, %v134_v38, %v477_v24  ;;  %v481_v42 = vpop.permute.xlu0 %480 }
  0x91   :  { %v483_v44 = vunpack.i.h.bf16 %v481_v42  ;;  %v482_v45 = vunpack.i.l.bf16 %v481_v42  ;;  %v154_v46 = vpack.c.bf16 %v136_v40, %v136_v40  ;;  %v145_v47 = vsel %vm124_vm3, %v140_v41, 0.0  ;;  %v330_v42 = vld [vmem:[%s845_s6] sm:$0xff]  ;;  %s653_s6 = smov [#allocation10]  }
  0x92   :  { %210 = vmatpush.bf16.msra.mxu2 %v148_v37  ;;  %v155_v49 = vpack.c.bf16 %v145_v47, %v145_v47  ;;  %v283_v13 = vpop.permute.xlu2 %282  ;;  %v311_v41 = vand.u32 15, %v745_v14  ;;  %s429_s28 = sshll.u32 %s653_s6, 4  ;;  %s430_s28 = int_to_ptr.vmem [resolvable:$true] %s429_s28 }
  0x93   :  { %v172_v50 = vsel %vm161_vm2, %v154_v46, 0  ;;  %v114_v51 = vsel %vm109_vm1, %v483_v44, %v482_v45  ;;  %v113_v52 = vsel %vm109_vm1, %v482_v45, %v492_v19  ;;  %v110_v58 = vsel %vm109_vm1, %v106_v39, %v483_v44 }
  0x94   :  { %222 = vmatpush.bf16.msra.mxu3 %v172_v50  ;;  %v444_v54 = vpack.c.bf16 %v710_v2, %v114_v51  ;;  %v147_v55 = vpack.c.bf16 %v714_v4, %v113_v52  ;;  %v175_v56 = vsel %vm161_vm2, %v155_v49, 0  ;;  %v150_v59 = vpack.c.bf16 %v722_v7, %v110_v58  ;;  %v329_v49 = vld [vmem:[#allocation7] sm:$0xf] }
  0x95   :  { %448 = vmatmul.msk.bf16.vlgmr.msra.gmra.mxu2 %vm157_vm5, %v156_v48  ;;  %vm323_vm8 = vcmp.ne.s32.totalorder %v311_v41, 15  ;;  %vm319_vm9 = vcmp.ne.s32.totalorder %v311_v41, 0 }
  0x96   :  { %445 = vmatpush.bf16.msk.msra.mxu0 %vm443_vm7, %v444_v54  ;;  %197 = vmatpush.bf16.msra.mxu1 %v147_v55  ;;  %vm451_vm10 = vmpackc.low %vm648_vm6, %vm319_vm9 }
  0x97   :  { %v258_v61 = vpop.permute.xlu1 %257 }
  0x98   :  { %223 = vmatpush.bf16.msra.mxu3 %v149_v57  ;;  %v247_v3 = vpop.permute.xlu0 %246 }
  0x99   :  { %446 = vmatmul.msk.bf16.vlgmr.msra.gmra.mxu0 %vm157_vm5, %v156_v48  ;;  %447 = vmatmul.msk.bf16.vlgmr.msra.gmra.mxu1 %vm157_vm5, %v156_v48 }
  0x9a   :  { %235 = vmatpush.bf16.msrb.mxu0 %v175_v56 }
  0x9b   :  { %449 = vmatmul.msk.bf16.vlgmr.msra.gmra.mxu3 %vm157_vm5, %v156_v48  ;;  %v293_v27 = vpop.permute.xlu2 %292 }
  0x9e   :  { %236 = vmatpush.bf16.msrb.mxu0 %v150_v59 }
  0x9f   :  { %v263_v63 = vpop.permute.xlu1 %262 }
  0xa1   :  { %v273_v20 = vpop.permute.xlu0 %272 }
  0xa8   :  { %v278_v9 = vpop.permute.xlu1 %277 }
  0xa9   :  { %450 = vmatmul.msk.bf16.vlgmr.msrb.gmra.mxu0 %vm157_vm5, %v156_v48 }
  0xb1   :  { %v288_v25 = vpop.permute.xlu1 %287 }
 0x116   :  { %v186_v5 = vpop.f32.mrf.mxu0  ;;  %v199_v6 = vpop.f32.mrf.mxu1 }
 0x117   :  { %v249_v10 = vmul.f32 %v247_v3, %v186_v5  ;;  %v260_v11 = vmul.f32 %v258_v61, %v199_v6 }
 0x118   :  { %v212_v8 = vpop.f32.mrf.mxu2 }
 0x119   :  { %v799_v17 = vadd.f32 %v253_v60, %v249_v10  ;;  %v801_v18 = vadd.f32 %v263_v63, %v260_v11  ;;  %v270_v12 = vmul.f32 %v268_v62, %v212_v8  ;;  %v375_v11 = vld [vmem:[#allocation8] sm:$0xf] }
 0x11b   :  { %v803_v23 = vadd.f32 %v273_v20, %v270_v12  ;;  %v296_v24 = vadd.f32 %v801_v18, %v799_v17  ;;  %v405_v12 = vadd.f32 %v801_v18, %v714_v4 }
 0x11d   :  { %v297_v30 = vadd.f32 %v296_v24, %v803_v23 }
 0x11e   :  { %v188_v15 = vpop.f32.mrf.mxu0  ;;  %v225_v16 = vpop.f32.mrf.mxu3 }
 0x11f   :  { %v201_v19 = vpop.f32.mrf.mxu1  ;;  %v280_v22 = vmul.f32 %v278_v9, %v225_v16  ;;  %v404_v15 = vadd.f32 %v799_v17, %v710_v2 }
 0x120   :  { %v214_v21 = vpop.f32.mrf.mxu2  ;;  %v406_v19 = vadd.f32 %v803_v23, %v706_v0 }
 0x121   :  { %v807_v26 = vadd.f32 %v283_v13, %v280_v22 }
 0x123   :  { %v298_v33 = vadd.f32 %v297_v30, %v807_v26  ;;  %v407_v20 = vadd.f32 %v807_v26, %v708_v1 }
 0x126   :  { %v238_v28 = vpop.f32.mrf.mxu0  ;;  %v227_v29 = vpop.f32.mrf.mxu3 }
 0x127   :  { %v290_v31 = vmul.f32 %v288_v25, %v238_v28 }
 0x129   :  { %v810_v32 = vadd.f32 %v293_v27, %v290_v31 }
 0x12b   :  { %v299_v34 = vadd.f32 %v298_v33, %v810_v32  ;;  %v408_v22 = vadd.f32 %v810_v32, %v722_v7 }
 0x12d   :  { %300 = vrot.lane.b32.xlu0 %v299_v34, %s650_s2 }
 0x12e   :  { %v240_v35 = vpop.f32.mrf.mxu0 }
 0x19f   :  { %v301_v36 = vpop.permute.xlu0 %300 }
 0x1a0   :  { %v302_v37 = vadd.f32 %v301_v36, %v299_v34 }
 0x1a2   :  { %303 = vrot.lane.b32.xlu1 %v302_v37, %s642_s4 }
 0x1aa   :  { %333 = vperm.xlu1 %503, %v330_v42  }
 0x214   :  { %v304_v38 = vpop.permute.xlu1 %303 }
 0x215   :  { %v305_v39 = vadd.f32 %v304_v38, %v302_v37 }
 0x217   :  { %v306_v40 = vmul.f32 0.05, %v305_v39 }
 0x219   :  { %320 = vrot.lane.b32.xlu0 %v306_v40, %s651_s3  ;;  %324 = vrot.lane.b32.xlu2 %v306_v40, %s652_s23 }
 0x21c   :  { %v334_v14 = vpop.permute.xlu1 %333 }
 0x221   :  { %381 = vperm.xlu2 %504, %v456_v53  }
 0x273   :  { %v325_v43 = vpop.permute.xlu2 %324 }
 0x274   :  { %v326_v44 = vsel %vm323_vm8, %v325_v43, 0.0 }
 0x275   :  { %v328_v45 = vpack.c.bf16 %v326_v44, %v326_v44 }
 0x277   :  { %v340_v46 = vsel %vm161_vm2, %v328_v45, 0 }
 0x278   :  { %348 = vmatpush.bf16.msrb.mxu1 %v340_v46 }
 0x27b   :  { %v382_v13 = vpop.permute.xlu2 %381 }
 0x28b   :  { %v321_v47 = vpop.permute.xlu0 %320 }
 0x28c   :  { %v452_v48 = vpack.c.bf16 %v306_v40, %v321_v47 }
 0x28e   :  { %453 = vmatpush.bf16.msk.msrb.mxu1 %vm451_vm10, %v452_v48 }
 0x291   :  { %454 = vmatmul.msk.bf16.vlgmr.msrb.gmra.mxu1 %vm157_vm5, %v329_v49 }
 0x30e   :  { %v351_v50 = vpop.f32.mrf.mxu1 }
 0x30f   :  { %v352_v51 = vadd.f32 %v351_v50, %v334_v14 }
 0x311   :  { %v455_v52 = vmul.f32 -1.442695, %v352_v51 }
 0x313   :  { %506 = vpow2.f32 %v455_v52 }
 0x316   :  { %v353_v54 = vpop.f32.mrf.mxu1 }
 0x319   :  { %v507_v55 = vpop.eup %506 }
 0x31a   :  { %v358_v56 = vadd.f32 1.0, %v507_v55 }
 0x31c   :  { %508 = vrcp.f32 %v358_v56  ;;  %v370_v60 = vand.u32 2147483648, %v358_v56  ;;  %v368_v62 = vand.u32 2147483647, %v358_v56  ;;  %vm364_vm12 = vweird.f32 %v358_v56 }
 0x31e   :  { %v371_v3 = vor.u32 1.1754944e-38, %v370_v60  ;;  %vm369_vm14 = vcmp.eq.f32.partialorder %v368_v62, 8.507059e+37 }
 0x322   :  { %v509_v57 = vpop.eup %508 }
 0x323   :  { %v360_v58 = vmul.f32 %v509_v57, %v358_v56  ;;  %vm365_vm11 = vweird.f32 %v509_v57 }
 0x324   :  { %vm366_vm13 = vmor %vm364_vm12, %vm365_vm11 }
 0x325   :  { %v361_v59 = vsub.f32 1.0, %v360_v58 }
 0x327   :  { %v362_v61 = vmul.f32 %v509_v57, %v361_v59 }
 0x329   :  { %v363_v63 = vadd.f32 %v509_v57, %v362_v61 }
 0x32b   :  { %v367_v5 = vsel %vm366_vm13, %v509_v57, %v363_v63 }
 0x32c   :  { %v372_v6 = vsel %vm369_vm14, %v371_v3, %v367_v5 }
 0x32d   :  { %v374_v8 = vmul.f32 %v372_v6, %v352_v51 }
 0x32f   :  { %v376_v9 = vpack.c.bf16 %v374_v8, %v374_v8 }
 0x331   :  { %v389_v10 = vsel %vm161_vm2, %v376_v9, 0 }
 0x332   :  { %398 = vmatpush.bf16.msrb.mxu2 %v389_v10 }
 0x335   :  { %457 = vmatmul.msk.bf16.vlgmr.msrb.gmra.mxu2 %vm384_vm15, %v375_v11 }
 0x3b8   :  { %v400_v16 = vpop.f32.mrf.mxu2 }
 0x3b9   :  { %v401_v21 = vadd.f32 %v400_v16, %v382_v13 }
 0x3bb   :  { %v409_v24 = vadd.f32 %v404_v15, %v401_v21  ;;  %v410_v25 = vadd.f32 %v405_v12, %v401_v21  ;;  %v411_v27 = vadd.f32 %v406_v19, %v401_v21  ;;  %v412_v28 = vadd.f32 %v407_v20, %v401_v21 }
 0x3bc   :  { %v413_v29 = vadd.f32 %v408_v22, %v401_v21 }
 0x3bd   :  { %v414_v2 = vmax.f32 %v409_v24, 0.0  ;;  %v415_v17 = vmax.f32 %v410_v25, 0.0  ;;  %v416_v30 = vmax.f32 %v411_v27, 0.0  ;;  %v417_v31 = vmax.f32 %v412_v28, 0.0 }
 0x3be   :  { %v418_v0 = vmax.f32 %v413_v29, 0.0 }
 0x3bf   :  { %419 = vst [vmem:[#allocation10] sm:$0xff] %v414_v2 }
 0x3c0   :  { %420 = vst [vmem:[#allocation10 + $0x8] sm:$0xff] %v415_v17  ;;  %v402_v1 = vpop.f32.mrf.mxu2 }
 0x3c1   :  { %421 = vst [vmem:[#allocation10 + $0x10] sm:$0xff] %v416_v30 }
 0x3c2   :  { %422 = vst [vmem:[#allocation10 + $0x18] sm:$0xff] %v417_v31 }
 0x3c3   :  { %423 = vst [vmem:[#allocation10 + $0x20] sm:$0xff] %v418_v0 }
 0x3c4   :  { %434 = dma.vmem_to_hbm [thread:$0]  %s430_s28, 640, %s432_s8, [#allocation4]  }
 0x3c5   :  { %636 = dma.done.wait [#allocation4], 640  }
 0x3c6   :  { %637 = vsyncadd [#allocation4], 4294966656 }
 0x3c7   :  { %439 = vsyncpa [#allocation3], 1 }
 0x3c8   :  { %440 = vsyncpa [#allocation6], 1 }
 0x3c9   :  { %441 = vsyncpa [#allocation9], 1 }
 0x3ca   :  { %442 = vsyncpa [#allocation4], 1 }

</bundles_post_ra>
